<compile_context>
chip_gen: v7x
topology: tpu7x:2x2x1
jax: 0.10.0
libtpu: 0.0.40
codegen_flags: <defaults>
</compile_context>

<pallas_src>
import functools

import jax
import jax.numpy as jnp
from jax.experimental import pallas as pl
from jax.experimental.pallas import tpu as pltpu

BN_EPS = 1e-5
LANE = 128
SUBLANE = 8
DEFAULT_TILE_N = 256                    # halve for very large H on v7x (64 MiB VMEM)
VMEM_LIMIT = 32 * 1024 * 1024           # explicit scoped-VMEM limit (safe on v5e/v6e/v7x)


def _round_up(x, m):
    return (x + m - 1) // m * m


def _pad2d(a, rows, cols):
    return jnp.pad(a, ((0, rows - a.shape[0]), (0, cols - a.shape[1])))


# ---------------------------------------------------------------------------
# Pass 1: Linear1 (MXU) + batch-statistics accumulation (sum, sum of squares).
# ---------------------------------------------------------------------------
def _pass1_kernel(x_ref, w1_ref, b1_ref,          # inputs
                  h_ref, mean_ref, rstd_ref,      # outputs
                  sum_sc, sq_sc,                  # VMEM scratch accumulators
                  *, tile_n, n_actual, need_mask):
    i = pl.program_id(0)

    @pl.when(i == 0)
    def _():
        sum_sc[...] = jnp.zeros_like(sum_sc)
        sq_sc[...] = jnp.zeros_like(sq_sc)

    # Linear 1: bf16 operands on the MXU, f32 accumulation; epilogue in f32.
    h = jnp.dot(x_ref[...].astype(jnp.bfloat16), w1_ref[...],
                preferred_element_type=jnp.float32) + b1_ref[...]
    h_ref[...] = h

    # Accumulate E[h] / E[h^2] numerators; mask out zero-padded batch rows.
    if need_mask:
        rows = i * tile_n + jax.lax.broadcasted_iota(jnp.int32, (tile_n, 1), 0)
        valid = (rows < n_actual).astype(jnp.float32)
        hv = h * valid
    else:
        hv = h
    sum_sc[...] += jnp.sum(hv, axis=0, keepdims=True)
    sq_sc[...] += jnp.sum(hv * h, axis=0, keepdims=True)

    @pl.when(i == pl.num_programs(0) - 1)
    def _():
        inv_n = 1.0 / float(n_actual)
        mean = sum_sc[...] * inv_n
        var = jnp.maximum(sq_sc[...] * inv_n - mean * mean, 0.0)
        mean_ref[...] = mean
        rstd_ref[...] = jax.lax.rsqrt(var + BN_EPS)


# ---------------------------------------------------------------------------
# Pass 2: BatchNorm normalize + affine, PReLU, Linear2 (MXU).
# ---------------------------------------------------------------------------
def _pass2_kernel(mean_ref, rstd_ref, gamma_ref, beta_ref, alpha_ref,
                  h_ref, w2_ref, b2_ref, o_ref):
    h = h_ref[...]                                           # f32 (tile_n, Hp)
    h_hat = (h - mean_ref[...]) * rstd_ref[...]              # f32 BN normalize
    h_bn = h_hat * gamma_ref[...] + beta_ref[...]
    a = alpha_ref[0, 0]                                      # SMEM scalar (PReLU)
    h_act = jnp.where(h_bn >= 0, h_bn, a * h_bn)
    out = jnp.dot(h_act.astype(jnp.bfloat16), w2_ref[...],
                  preferred_element_type=jnp.float32) + b2_ref[...]
    o_ref[...] = out.astype(o_ref.dtype)


# ---------------------------------------------------------------------------
# Wrapper
# ---------------------------------------------------------------------------
def mlp_forward(x, params, tile_n=DEFAULT_TILE_N):
    w1, b1, gamma, beta, alpha, w2, b2 = params
    n, i_dim = x.shape
    h_dim = w1.shape[1]
    o_dim = w2.shape[1]

    # Lane-dense padding: last dims to multiples of 128.
    i_p = _round_up(i_dim, LANE)
    h_p = _round_up(h_dim, LANE)
    o_p = _round_up(o_dim, LANE)

    # N tiling: sublane-aligned tile, N padded up to a multiple of the tile.
    n_sub = _round_up(max(n, SUBLANE), SUBLANE)
    tn = min(tile_n, n_sub)
    n_p = _round_up(n_sub, tn)
    grid_n = n_p // tn

    x_p = _pad2d(x.astype(jnp.float32), n_p, i_p)
    w1_p = _pad2d(w1, i_p, h_p).astype(jnp.bfloat16)     # matmul operands in bf16
    b1_p = _pad2d(b1, 1, h_p).astype(jnp.float32)
    gamma_p = _pad2d(gamma, 1, h_p).astype(jnp.float32)
    beta_p = _pad2d(beta, 1, h_p).astype(jnp.float32)
    w2_p = _pad2d(w2, h_p, o_p).astype(jnp.bfloat16)
    b2_p = _pad2d(b2, 1, o_p).astype(jnp.float32)
    alpha_s = jnp.reshape(alpha, (1, 1)).astype(jnp.float32)

    const = lambda shape: pl.BlockSpec(shape, lambda i: (0,) * len(shape))

    # ---- Pass 1: Linear1 + batch statistics (N axis is a reduction) ----
    h_full, mean, rstd = pl.pallas_call(
        functools.partial(_pass1_kernel, tile_n=tn, n_actual=n,
                          need_mask=(n_p != n)),
        out_shape=(jax.ShapeDtypeStruct((n_p, h_p), jnp.float32),
                   jax.ShapeDtypeStruct((1, h_p), jnp.float32),
                   jax.ShapeDtypeStruct((1, h_p), jnp.float32)),
        grid=(grid_n,),
        in_specs=[
            pl.BlockSpec((tn, i_p), lambda i: (i, 0)),   # x: advances with tile
            const((i_p, h_p)),                           # w1: VMEM-resident
            const((1, h_p)),                             # b1: VMEM-resident
        ],
        out_specs=(
            pl.BlockSpec((tn, h_p), lambda i: (i, 0)),   # h: advances with tile
            const((1, h_p)),                             # mean (written at last step)
            const((1, h_p)),                             # rstd (written at last step)
        ),
        scratch_shapes=[pltpu.VMEM((1, h_p), jnp.float32),
                        pltpu.VMEM((1, h_p), jnp.float32)],
        compiler_params=pltpu.CompilerParams(
            dimension_semantics=("arbitrary",),
            vmem_limit_bytes=VMEM_LIMIT),
        cost_estimate=pl.CostEstimate(
            flops=2 * n_p * i_p * h_p,
            transcendentals=0,
            bytes_accessed=4 * (n_p * i_p + 2 * n_p * h_p) + 2 * i_p * h_p),
    )(x_p, w1_p, b1_p)

    # ---- Pass 2: BN normalize + PReLU + Linear2 (embarrassingly parallel) ----
    out_p = pl.pallas_call(
        _pass2_kernel,
        out_shape=jax.ShapeDtypeStruct((n_p, o_p), jnp.float32),
        grid=(grid_n,),
        in_specs=[
            const((1, h_p)),                                     # mean
            const((1, h_p)),                                     # rstd
            const((1, h_p)),                                     # gamma
            const((1, h_p)),                                     # beta
            pl.BlockSpec(memory_space=pltpu.MemorySpace.SMEM),   # alpha scalar
            pl.BlockSpec((tn, h_p), lambda i: (i, 0)),           # h tile
            const((h_p, o_p)),                                   # w2: VMEM-resident
            const((1, o_p)),                                     # b2: VMEM-resident
        ],
        out_specs=pl.BlockSpec((tn, o_p), lambda i: (i, 0)),
        compiler_params=pltpu.CompilerParams(
            dimension_semantics=("parallel",),
            vmem_limit_bytes=VMEM_LIMIT),
        cost_estimate=pl.CostEstimate(
            flops=2 * n_p * h_p * o_p,
            transcendentals=0,
            bytes_accessed=4 * (n_p * h_p + n_p * o_p) + 2 * h_p * o_p),
    )(mean, rstd, gamma_p, beta_p, alpha_s, h_full, w2_p, b2_p)

    return out_p[:n, :o_dim]


# ---------------------------------------------------------------------------
# Parameter init (PyTorch-default style) and pure-JAX references
# ---------------------------------------------------------------------------
def init_params(key, inp_size, outp_size, hidden_size):
    k1, k2, k3, k4 = jax.random.split(key, 4)
    bound1 = 1.0 / jnp.sqrt(inp_size)
    bound2 = 1.0 / jnp.sqrt(hidden_size)
    # weights stored pre-transposed: (in_features, out_features)
    w1 = jax.random.uniform(k1, (inp_size, hidden_size), jnp.float32, -bound1, bound1)
    b1 = jax.random.uniform(k2, (1, hidden_size), jnp.float32, -bound1, bound1)
    gamma = jnp.ones((1, hidden_size), jnp.float32)    # BatchNorm1d weight
    beta = jnp.zeros((1, hidden_size), jnp.float32)    # BatchNorm1d bias
    alpha = jnp.full((1, 1), 0.25, jnp.float32)        # PReLU default
    w2 = jax.random.uniform(k3, (hidden_size, outp_size), jnp.float32, -bound2, bound2)
    b2 = jax.random.uniform(k4, (1, outp_size), jnp.float32, -bound2, bound2)
    return (w1, b1, gamma, beta, alpha, w2, b2)


def mlp_reference_f32(x, params):
    """Full-f32 reference of the same forward pass."""
    w1, b1, gamma, beta, alpha, w2, b2 = params
    h = x @ w1 + b1
    mean = jnp.mean(h, axis=0, keepdims=True)
    var = jnp.mean((h - mean) ** 2, axis=0, keepdims=True)
    h = (h - mean) / jnp.sqrt(var + BN_EPS) * gamma + beta
    h = jnp.where(h >= 0, h, alpha[0, 0] * h)
    return h @ w2 + b2


def mlp_reference_bf16(x, params):
    """Reference mimicking the kernel's bf16-matmul / f32-epilogue precision."""
    w1, b1, gamma, beta, alpha, w2, b2 = params
    h = jnp.dot(x.astype(jnp.bfloat16), w1.astype(jnp.bfloat16),
                preferred_element_type=jnp.float32) + b1
    mean = jnp.mean(h, axis=0, keepdims=True)
    var = jnp.maximum(jnp.mean(h * h, axis=0, keepdims=True) - mean * mean, 0.0)
    h = (h - mean) * jax.lax.rsqrt(var + BN_EPS) * gamma + beta
    h = jnp.where(h >= 0, h, alpha[0, 0] * h)
    return jnp.dot(h.astype(jnp.bfloat16), w2.astype(jnp.bfloat16),
                   preferred_element_type=jnp.float32) + b2


if __name__ == "__main__":
    batch, inp_size, hidden_size, outp_size = 8, 32, 64, 16

    key = jax.random.PRNGKey(0)
    kx, kp = jax.random.split(key)
    x = jax.random.normal(kx, (batch, inp_size), jnp.float32)
    params = init_params(kp, inp_size, outp_size, hidden_size)

    out = mlp_forward(x, params)
    out = jax.block_until_ready(out)
    assert out.shape == (batch, outp_size)

    ref_bf16 = mlp_reference_bf16(x, params)
    ref_f32 = mlp_reference_f32(x, params)
    assert jnp.allclose(out, ref_bf16, atol=2e-3, rtol=2e-3), \
        "mismatch vs bf16-precision reference"
    assert jnp.allclose(out, ref_f32, atol=5e-2, rtol=5e-2), \
        "mismatch vs f32 reference"

    print("KERNEL_OK")
</pallas_src>

<mosaic_0001>
module attributes {stable_mosaic.version = 11 : i64} {
  func.func @_pass1_kernel(%arg0: i32, %arg1: memref<8x128xf32, #tpu.memory_space<vmem>>, %arg2: memref<128x128xbf16, #tpu.memory_space<vmem>>, %arg3: memref<1x128xf32, #tpu.memory_space<vmem>>, %arg4: memref<8x128xf32, #tpu.memory_space<vmem>>, %arg5: memref<1x128xf32, #tpu.memory_space<vmem>>, %arg6: memref<1x128xf32, #tpu.memory_space<vmem>>, %arg7: memref<1x128xf32, #tpu.memory_space<vmem>>, %arg8: memref<1x128xf32, #tpu.memory_space<vmem>>) attributes {dimension_semantics = [#tpu.dimension_semantics<arbitrary>], iteration_bounds = array<i64: 1>, scalar_prefetch = 0 : i64, scratch_operands = 2 : i64, tpu.core_type = #tpu.core_type<tc>, window_params = [{transform_indices = @transform_0, window_bounds = array<i64: 8, 128>}, {pipeline_mode = #tpu.pipeline_mode<synchronous>, transform_indices = @transform_1, window_bounds = array<i64: 128, 128>}, {pipeline_mode = #tpu.pipeline_mode<synchronous>, transform_indices = @transform_2, window_bounds = array<i64: 1, 128>}, {transform_indices = @transform_3, window_bounds = array<i64: 8, 128>}, {pipeline_mode = #tpu.pipeline_mode<synchronous>, transform_indices = @transform_4, window_bounds = array<i64: 1, 128>}, {pipeline_mode = #tpu.pipeline_mode<synchronous>, transform_indices = @transform_5, window_bounds = array<i64: 1, 128>}]} {
    %c0_i32 = arith.constant 0 : i32
    %0 = arith.cmpi eq, %arg0, %c0_i32 : i32
    %1 = arith.extui %0 : i1 to i32
    %c0_i32_0 = arith.constant 0 : i32
    %2 = arith.cmpi ne, %1, %c0_i32_0 : i32
    scf.if %2 {
      %cst_20 = arith.constant 0.000000e+00 : f32
      %25 = vector.broadcast %cst_20 : f32 to vector<1x128xf32>
      %c0_21 = arith.constant 0 : index
      %c0_22 = arith.constant 0 : index
      %26 = vector.load %arg7[%c0_21, %c0_22] : memref<1x128xf32, #tpu.memory_space<vmem>>, vector<1x128xf32>
      tpu.vector_store %arg7[%c0_21, %c0_22], %25 {strides = array<i32>} : memref<1x128xf32, #tpu.memory_space<vmem>>, vector<1x128xf32>,
      %cst_23 = arith.constant 0.000000e+00 : f32
      %27 = vector.broadcast %cst_23 : f32 to vector<1x128xf32>
      %c0_24 = arith.constant 0 : index
      %c0_25 = arith.constant 0 : index
      %28 = vector.load %arg8[%c0_24, %c0_25] : memref<1x128xf32, #tpu.memory_space<vmem>>, vector<1x128xf32>
      tpu.vector_store %arg8[%c0_24, %c0_25], %27 {strides = array<i32>} : memref<1x128xf32, #tpu.memory_space<vmem>>, vector<1x128xf32>,
    } else {
    }
    %c0 = arith.constant 0 : index
    %c0_1 = arith.constant 0 : index
    %3 = vector.load %arg1[%c0, %c0_1] : memref<8x128xf32, #tpu.memory_space<vmem>>, vector<8x128xf32>
    %4 = arith.truncf %3 : vector<8x128xf32> to vector<8x128xbf16>
    %c0_2 = arith.constant 0 : index
    %c0_3 = arith.constant 0 : index
    %5 = vector.load %arg2[%c0_2, %c0_3] : memref<128x128xbf16, #tpu.memory_space<vmem>>, vector<128x128xbf16>
    %cst = arith.constant dense<0.000000e+00> : vector<8x128xf32>
    %6 = tpu.matmul %4, %5, %cst {dimension_numbers = #tpu.dot_dimension_numbers<[1], [0], [0], [1], [0, 0, 1, 1], [], []>} : vector<8x128xbf16>, vector<128x128xbf16>, vector<8x128xf32> -> vector<8x128xf32>
    %c0_4 = arith.constant 0 : index
    %c0_5 = arith.constant 0 : index
    %7 = vector.load %arg3[%c0_4, %c0_5] : memref<1x128xf32, #tpu.memory_space<vmem>>, vector<1x128xf32>
    %8 = vector.broadcast %7 : vector<1x128xf32> to vector<8x128xf32>
    %9 = arith.addf %6, %8 : vector<8x128xf32>
    %c0_6 = arith.constant 0 : index
    %c0_7 = arith.constant 0 : index
    %10 = vector.load %arg4[%c0_6, %c0_7] : memref<8x128xf32, #tpu.memory_space<vmem>>, vector<8x128xf32>
    tpu.vector_store %arg4[%c0_6, %c0_7], %9 {strides = array<i32>} : memref<8x128xf32, #tpu.memory_space<vmem>>, vector<8x128xf32>,
    %c0_8 = arith.constant 0 : index
    %c0_9 = arith.constant 0 : index
    %11 = vector.load %arg7[%c0_8, %c0_9] : memref<1x128xf32, #tpu.memory_space<vmem>>, vector<1x128xf32>
    %cst_10 = arith.constant dense<0.000000e+00> : vector<128xf32>
    %12 = vector.multi_reduction <add>, %9, %cst_10 [0] : vector<8x128xf32> to vector<128xf32>
    %13 = vector.shape_cast %12 : vector<128xf32> to vector<1x128xf32>
    %14 = arith.addf %11, %13 : vector<1x128xf32>
    %c0_11 = arith.constant 0 : index
    %c0_12 = arith.constant 0 : index
    %15 = vector.load %arg7[%c0_11, %c0_12] : memref<1x128xf32, #tpu.memory_space<vmem>>, vector<1x128xf32>
    tpu.vector_store %arg7[%c0_11, %c0_12], %14 {strides = array<i32>} : memref<1x128xf32, #tpu.memory_space<vmem>>, vector<1x128xf32>,
    %c0_13 = arith.constant 0 : index
    %c0_14 = arith.constant 0 : index
    %16 = vector.load %arg8[%c0_13, %c0_14] : memref<1x128xf32, #tpu.memory_space<vmem>>, vector<1x128xf32>
    %17 = arith.mulf %9, %9 : vector<8x128xf32>
    %cst_15 = arith.constant dense<0.000000e+00> : vector<128xf32>
    %18 = vector.multi_reduction <add>, %17, %cst_15 [0] : vector<8x128xf32> to vector<128xf32>
    %19 = vector.shape_cast %18 : vector<128xf32> to vector<1x128xf32>
    %20 = arith.addf %16, %19 : vector<1x128xf32>
    %c0_16 = arith.constant 0 : index
    %c0_17 = arith.constant 0 : index
    %21 = vector.load %arg8[%c0_16, %c0_17] : memref<1x128xf32, #tpu.memory_space<vmem>>, vector<1x128xf32>
    tpu.vector_store %arg8[%c0_16, %c0_17], %20 {strides = array<i32>} : memref<1x128xf32, #tpu.memory_space<vmem>>, vector<1x128xf32>,
    %c0_i32_18 = arith.constant 0 : i32
    %22 = arith.cmpi eq, %arg0, %c0_i32_18 : i32
    %23 = arith.extui %22 : i1 to i32
    %c0_i32_19 = arith.constant 0 : i32
    %24 = arith.cmpi ne, %23, %c0_i32_19 : i32
    scf.if %24 {
      %c0_20 = arith.constant 0 : index
      %c0_21 = arith.constant 0 : index
      %25 = vector.load %arg7[%c0_20, %c0_21] : memref<1x128xf32, #tpu.memory_space<vmem>>, vector<1x128xf32>
      %cst_22 = arith.constant 1.250000e-01 : f32
      %26 = vector.broadcast %cst_22 : f32 to vector<1x128xf32>
      %27 = arith.mulf %25, %26 : vector<1x128xf32>
      %c0_23 = arith.constant 0 : index
      %c0_24 = arith.constant 0 : index
      %28 = vector.load %arg8[%c0_23, %c0_24] : memref<1x128xf32, #tpu.memory_space<vmem>>, vector<1x128xf32>
      %cst_25 = arith.constant 1.250000e-01 : f32
      %29 = vector.broadcast %cst_25 : f32 to vector<1x128xf32>
      %30 = arith.mulf %28, %29 : vector<1x128xf32>
      %31 = arith.mulf %27, %27 : vector<1x128xf32>
      %32 = arith.subf %30, %31 : vector<1x128xf32>
      %cst_26 = arith.constant 0.000000e+00 : f32
      %33 = vector.broadcast %cst_26 : f32 to vector<1x128xf32>
      %34 = arith.maximumf %32, %33 : vector<1x128xf32>
      %c0_27 = arith.constant 0 : index
      %c0_28 = arith.constant 0 : index
      %35 = vector.load %arg5[%c0_27, %c0_28] : memref<1x128xf32, #tpu.memory_space<vmem>>, vector<1x128xf32>
      tpu.vector_store %arg5[%c0_27, %c0_28], %27 {strides = array<i32>} : memref<1x128xf32, #tpu.memory_space<vmem>>, vector<1x128xf32>,
      %cst_29 = arith.constant 9.99999974E-6 : f32
      %36 = vector.broadcast %cst_29 : f32 to vector<1x128xf32>
      %37 = arith.addf %34, %36 : vector<1x128xf32>
      %38 = math.rsqrt %37 : vector<1x128xf32>
      %c0_30 = arith.constant 0 : index
      %c0_31 = arith.constant 0 : index
      %39 = vector.load %arg6[%c0_30, %c0_31] : memref<1x128xf32, #tpu.memory_space<vmem>>, vector<1x128xf32>
      tpu.vector_store %arg6[%c0_30, %c0_31], %38 {strides = array<i32>} : memref<1x128xf32, #tpu.memory_space<vmem>>, vector<1x128xf32>,
    } else {
    }
    return
  }
  func.func @transform_0(%arg0: i32) -> (i32, i32) {
    %c0_i32 = arith.constant 0 : i32
    %c0_i32_0 = arith.constant 0 : i32
    return %arg0, %c0_i32 : i32, i32
  }
  func.func @transform_1(%arg0: i32) -> (i32, i32) {
    %c0_i32 = arith.constant 0 : i32
    %c0_i32_0 = arith.constant 0 : i32
    %c0_i32_1 = arith.constant 0 : i32
    return %c0_i32, %c0_i32_0 : i32, i32
  }
  func.func @transform_2(%arg0: i32) -> (i32, i32) {
    %c0_i32 = arith.constant 0 : i32
    %c0_i32_0 = arith.constant 0 : i32
    %c0_i32_1 = arith.constant 0 : i32
    return %c0_i32, %c0_i32_0 : i32, i32
  }
  func.func @transform_3(%arg0: i32) -> (i32, i32) {
    %c0_i32 = arith.constant 0 : i32
    %c0_i32_0 = arith.constant 0 : i32
    return %arg0, %c0_i32 : i32, i32
  }
  func.func @transform_4(%arg0: i32) -> (i32, i32) {
    %c0_i32 = arith.constant 0 : i32
    %c0_i32_0 = arith.constant 0 : i32
    %c0_i32_1 = arith.constant 0 : i32
    return %c0_i32, %c0_i32_0 : i32, i32
  }
  func.func @transform_5(%arg0: i32) -> (i32, i32) {
    %c0_i32 = arith.constant 0 : i32
    %c0_i32_0 = arith.constant 0 : i32
    %c0_i32_1 = arith.constant 0 : i32
    return %c0_i32, %c0_i32_0 : i32, i32
  }
}

</mosaic_0001>

<bundles_post_ra>
// kernel: tpu_custom_call.1
= control target key start
LH: loop header
LB: loop body
LE: loop exit
PB: predicated region body
PF: predicated region fallthrough
CT: control target
= control target key end

     0   :  { %11 = vsyncpa [#allocation5], 0  ;;  %s526_s0 = inlined_call_operand.hbm [shape: f32[8,128], index: 0, kind: input, shape index: {}]   ;;  %s527_s1 = inlined_call_operand.hbm [shape: bf16[128,128], index: 1, kind: input, shape index: {}]   ;;  %s528_s2 = inlined_call_operand.vmem [shape: f32[1,128], index: 2, kind: input, shape index: {}]   ;;  %s529_s3 = inlined_call_operand.hbm [shape: f32[8,128], index: 3, kind: output, shape index: {0}]   ;;  %s530_s4 = inlined_call_operand.hbm [shape: f32[1,128], index: 4, kind: output, shape index: {1}]   ;;  %s531_s5 = inlined_call_operand.hbm [shape: f32[1,128], index: 5, kind: output, shape index: {2}]  }
   0x1   :  { %12 = vsyncpa [#allocation8], 0 }
   0x2   :  { %13 = vsyncpa [#allocation6], 0 }
   0x3   :  { %14 = vsyncpa [#allocation11], 0  ;;  %s417_s18 = smov [#allocation4]   ;;  %s418_s20 = smov [#allocation7]  }
   0x4   :  { %s21_s19 = sshll.u32 %s417_s18, 4  ;;  %s30_s21 = sshll.u32 %s418_s20, 4  ;;  %s22_s19 = int_to_ptr.vmem [resolvable:$true] %s21_s19  ;;  %s456_s21 = int_to_ptr.vmem [resolvable:$true] %s30_s21 }
   0x5   :  { %s299_s24 = scalar_lea.hbm %s526_s0, 128 }
   0x6   :  { %p300_p0 = scmp.ne.s32.totalorder %s526_s0, %s299_s24  ;;  %p303_p1 = scmp.lt.u32.totalorder %s299_s24, %s526_s0 }
   0x8   :  { %p305_p2 = pnand %p303_p1, %p300_p0 }
   0xa   :  { %308 = shalt.err (!%p305_p2)
}
   0xb   :  { %s309_s29 = scalar_lea.vmem %s22_s19, 128  ;;  %p314_p4 = scmp.lt.s32.totalorder %s22_s19, %s22_s19 }
   0xc   :  { %p310_p3 = scmp.ne.s32.totalorder %s22_s19, %s309_s29  ;;  %p315_p5 = scmp.lt.s32.totalorder %s309_s29, %s309_s29 }
   0xe   :  { %p316_p6 = por %p315_p5, %p314_p4 }
  0x10   :  { %p317_p7 = pnand %p316_p6, %p310_p3 }
  0x12   :  { %320 = shalt.err (!%p317_p7)
}
  0x13   :  { %24 = dma.hbm_to_vmem [thread:$0]  %s526_s0, 128, %s22_s19, [#allocation5]  }
  0x14   :  { %s321_s9 = scalar_lea.hbm %s527_s1, 1024 }
  0x15   :  { %p322_p8 = scmp.ne.s32.totalorder %s527_s1, %s321_s9  ;;  %p325_p9 = scmp.lt.u32.totalorder %s321_s9, %s527_s1 }
  0x17   :  { %p327_p10 = pnand %p325_p9, %p322_p8 }
  0x19   :  { %330 = shalt.err (!%p327_p10)
}
  0x1a   :  { %s331_s14 = scalar_lea.vmem %s456_s21, 1024  ;;  %p336_p12 = scmp.lt.s32.totalorder %s456_s21, %s456_s21 }
  0x1b   :  { %p332_p11 = scmp.ne.s32.totalorder %s456_s21, %s331_s14  ;;  %p337_p13 = scmp.lt.s32.totalorder %s331_s14, %s331_s14 }
  0x1d   :  { %p338_p0 = por %p337_p13, %p336_p12 }
  0x1f   :  { %p339_p1 = pnand %p338_p0, %p332_p11 }
  0x21   :  { %342 = shalt.err (!%p339_p1)
}
  0x22   :  { %s419_s0 = smov 64   ;;  %s420_s15 = smov 4  }
  0x23   :  { %36 = dma.hbm_to_vmem [thread:$0]  %s527_s1, 1024, %s456_s21, [#allocation8], %s419_s0, %s419_s0, %s420_s15  }
  0x24   :  { %409 = dma.done.wait [#allocation5], 128  }
  0x25   :  { %410 = vsyncadd [#allocation5], 4294967168 }
  0x26   :  { %411 = dma.done.wait [#allocation8], 1024  }
  0x27   :  { %412 = vsyncadd [#allocation8], 4294966272  ;;  %v421_v0 = vmov 0.0   ;;  %vm422_vm0 = vmmov 0   ;;  %v289_v1 = vld [vmem:[#allocation7] sm:$0xff]   ;;  %v290_v2 = vld [vmem:[#allocation7 + $0x8] sm:$0xff]  }
  0x28   :  { %260 = vmatprep.subr.bf16.mxu0 %v421_v0  ;;  %50 = vst [vmem:[#allocation2] sm:$0x1] %v421_v0  ;;  %51 = vst [vmem:[#allocation3] sm:$0x1] %v421_v0  ;;  %276 = vmatprep.mubr.msk.bf16.mxu0 %vm422_vm0, %v421_v0  ;;  %v291_v3 = vld [vmem:[#allocation7 + $0x10] sm:$0xff]   ;;  %v292_v4 = vld [vmem:[#allocation7 + $0x18] sm:$0xff]  }
  0x29   :  { %261 = vmatpush3.bf16.msra.mxu0 %v289_v1  ;;  %v293_v5 = vld [vmem:[#allocation7 + $0x20] sm:$0xff]   ;;  %v294_v6 = vld [vmem:[#allocation7 + $0x28] sm:$0xff]   ;;  %v295_v7 = vld [vmem:[#allocation7 + $0x30] sm:$0xff]   ;;  %s423_s19 = smov [#allocation9]  }
  0x2a   :  { %262 = vmatprep.subr.bf16.mxu0 %v421_v0  ;;  %v296_v8 = vld [vmem:[#allocation7 + $0x38] sm:$0xff]   ;;  %v242_v11 = vld [vmem:[%s528_s2] ss:$0 sm:$0xff]  ;;  %s205_s20 = sshll.u32 %s423_s19, 4  ;;  %s206_s20 = int_to_ptr.vmem [resolvable:$true] %s205_s20 }
  0x2b   :  { %v52_v9 = vld [vmem:[#allocation4] sm:$0xff]  ;;  %s343_s21 = scalar_lea.vmem %s206_s20, 128  ;;  %p348_p3 = scmp.lt.s32.totalorder %s206_s20, %s206_s20 }
  0x2c   :  { %v53_v10 = vpack.c.bf16 %v52_v9, %v52_v9  ;;  %p344_p2 = scmp.ne.s32.totalorder %s206_s20, %s343_s21  ;;  %p349_p4 = scmp.lt.s32.totalorder %s343_s21, %s343_s21 }
  0x2d   :  { %263 = vmatpush3.bf16.msra.mxu0 %v290_v2 }
  0x2e   :  { %264 = vmatprep.subr.bf16.mxu0 %v421_v0  ;;  %p350_p5 = por %p349_p4, %p348_p3 }
  0x30   :  { %p351_p6 = pnand %p350_p5, %p344_p2 }
  0x31   :  { %265 = vmatpush3.bf16.msra.mxu0 %v291_v3 }
  0x32   :  { %266 = vmatprep.subr.bf16.mxu0 %v421_v0 }
  0x35   :  { %267 = vmatpush3.bf16.msra.mxu0 %v292_v4 }
  0x36   :  { %268 = vmatprep.subr.bf16.mxu0 %v421_v0 }
  0x39   :  { %269 = vmatpush3.bf16.msra.mxu0 %v293_v5 }
  0x3a   :  { %270 = vmatprep.subr.bf16.mxu0 %v421_v0 }
  0x3d   :  { %271 = vmatpush3.bf16.msra.mxu0 %v294_v6 }
  0x3e   :  { %272 = vmatprep.subr.bf16.mxu0 %v421_v0 }
  0x41   :  { %273 = vmatpush3.bf16.msra.mxu0 %v295_v7 }
  0x42   :  { %274 = vmatprep.subr.bf16.mxu0 %v421_v0 }
  0x45   :  { %275 = vmatpush3.bf16.msra.mxu0 %v296_v8 }
  0x48   :  { %277 = vmatmul.mubr.bf16.vlgmr.msra.gmra.mrb[0].mxu0 %v53_v10 }
 0x11b   :  { %v159_v12 = vpop.f32.mrb[0].mxu0 }
 0x11c   :  { %v160_v13 = vadd.f32 %v242_v11, %v159_v12  ;;  %v278_v14 = vpop.f32.mrb[1].mxu0 }
 0x11d   :  { %v162_v15 = vpop.f32.mrb[2].mxu0 }
 0x11e   :  { %v167_v16 = vrot.slane %v160_v13, 4  ;;  %v176_v17 = vmul.f32 %v160_v13, %v160_v13  ;;  %165 = vst [vmem:[#allocation9] sm:$0xff] %v160_v13  ;;  %v279_v18 = vpop.f32.mrb[3].mxu0 }
 0x11f   :  { %354 = shalt.err (!%p351_p6)
}
 0x120   :  { %s355_s23 = scalar_lea.hbm %s529_s3, 128 }
 0x121   :  { %p356_p7 = scmp.ne.s32.totalorder %s529_s3, %s355_s23  ;;  %p359_p8 = scmp.lt.u32.totalorder %s355_s23, %s529_s3 }
 0x123   :  { %p361_p9 = pnand %p359_p8, %p356_p7 }
 0x125   :  { %364 = shalt.err (!%p361_p9)
}
 0x126   :  { %208 = dma.vmem_to_hbm [thread:$0]  %s206_s20, 128, %s529_s3, [#allocation6]   ;;  %v168_v19 = vadd.f32 %v167_v16, %v160_v13  ;;  %v177_v20 = vrot.slane %v176_v17, 4  ;;  %v166_v27 = vld [vmem:[#allocation2] sm:$0x1] }
 0x127   :  { %v175_v30 = vld [vmem:[#allocation3] sm:$0x1]  ;;  %s424_s30 = smov [#allocation10]  }
 0x128   :  { %v169_v21 = vrot.slane %v168_v19, 2  ;;  %v178_v22 = vadd.f32 %v177_v20, %v176_v17  ;;  %s215_s6 = sshll.u32 %s424_s30, 4  ;;  %s216_s6 = int_to_ptr.vmem [resolvable:$true] %s215_s6 }
 0x129   :  { %s365_s3 = scalar_lea.vmem %s216_s6, 16  ;;  %s369_s7 = scalar_lea.vmem %s216_s6, 32 }
 0x12a   :  { %v170_v23 = vadd.f32 %v169_v21, %v168_v19  ;;  %v179_v24 = vrot.slane %v178_v22, 2  ;;  %p366_p10 = scmp.ne.s32.totalorder %s216_s6, %s365_s3  ;;  %p370_p11 = scmp.lt.s32.totalorder %s216_s6, %s216_s6 }
 0x12b   :  { %p371_p12 = scmp.lt.s32.totalorder %s369_s7, %s365_s3 }
 0x12c   :  { %v171_v25 = vrot.slane %v170_v23, 1  ;;  %v180_v26 = vadd.f32 %v179_v24, %v178_v22 }
 0x12d   :  { %p372_p13 = por %p371_p12, %p370_p11 }
 0x12e   :  { %v172_v28 = vadd.f32 %v171_v25, %v170_v23  ;;  %v181_v29 = vrot.slane %v180_v26, 1 }
 0x12f   :  { %p373_p0 = pnand %p372_p13, %p366_p10 }
 0x130   :  { %v173_v31 = vadd.f32 %v172_v28, %v166_v27  ;;  %v182_v32 = vadd.f32 %v181_v29, %v180_v26 }
 0x132   :  { %174 = vst [vmem:[#allocation2] sm:$0x1] %v173_v31  ;;  %v183_v33 = vadd.f32 %v182_v32, %v175_v30 }
 0x134   :  { %184 = vst [vmem:[#allocation3] sm:$0x1] %v183_v33 }
 0x139   :  { %v188_v34 = vld [vmem:[#allocation2] sm:$0x1] }
 0x13a   :  { %v189_v35 = vmul.f32 0.125, %v188_v34 }
 0x13b   :  { %v190_v36 = vld [vmem:[#allocation3] sm:$0x1] }
 0x13c   :  { %v191_v37 = vmul.f32 0.125, %v190_v36  ;;  %v192_v38 = vmul.f32 %v189_v35, %v189_v35  ;;  %195 = vst [vmem:[#allocation10] sm:$0x1] %v189_v35 }
 0x13d   :  { %376 = shalt.err (!%p373_p0)
}
 0x13e   :  { %s377_s10 = scalar_lea.hbm %s530_s4, 16 }
 0x13f   :  { %p378_p1 = scmp.ne.s32.totalorder %s530_s4, %s377_s10  ;;  %p381_p2 = scmp.lt.u32.totalorder %s377_s10, %s530_s4 }
 0x141   :  { %p383_p3 = pnand %p381_p2, %p378_p1 }
 0x143   :  { %386 = shalt.err (!%p383_p3)
}
 0x144   :  { %218 = dma.vmem_to_hbm [thread:$0]  %s216_s6, 16, %s530_s4, [#allocation11]   ;;  %v193_v39 = vsub.f32 %v191_v37, %v192_v38 }
 0x145   :  { %s425_s16 = smov [#allocation12]  }
 0x146   :  { %v194_v40 = vmax.f32 %v193_v39, 0.0  ;;  %s225_s17 = sshll.u32 %s425_s16, 4  ;;  %s226_s17 = int_to_ptr.vmem [resolvable:$true] %s225_s17 }
 0x147   :  { %s387_s1 = scalar_lea.vmem %s226_s17, 16  ;;  %s391_s18 = scalar_lea.vmem %s226_s17, 32 }
 0x148   :  { %v196_v41 = vadd.f32 1e-05, %v194_v40  ;;  %p388_p4 = scmp.ne.s32.totalorder %s226_s17, %s387_s1  ;;  %p392_p5 = scmp.lt.s32.totalorder %s226_s17, %s226_s17 }
 0x149   :  { %p393_p6 = scmp.lt.s32.totalorder %s391_s18, %s387_s1 }
 0x14a   :  { %297 = vrsqrt.f32 %v196_v41 }
 0x14b   :  { %p394_p7 = por %p393_p6, %p392_p5 }
 0x14d   :  { %p395_p8 = pnand %p394_p7, %p388_p4 }
 0x154   :  { %v298_v42 = vpop.eup %297 }
 0x155   :  { %198 = vst [vmem:[#allocation12] sm:$0x1] %v298_v42 }
 0x156   :  { %398 = shalt.err (!%p395_p8)
}
 0x157   :  { %s399_s4 = scalar_lea.hbm %s531_s5, 16 }
 0x158   :  { %p400_p9 = scmp.ne.s32.totalorder %s531_s5, %s399_s4  ;;  %p403_p10 = scmp.lt.u32.totalorder %s399_s4, %s531_s5 }
 0x15a   :  { %p405_p11 = pnand %p403_p10, %p400_p9 }
 0x15c   :  { %408 = shalt.err (!%p405_p11)
}
 0x15d   :  { %228 = dma.vmem_to_hbm [thread:$0]  %s226_s17, 16, %s531_s5, [#allocation11]  }
 0x15e   :  { %413 = dma.done.wait [#allocation6], 128  }
 0x15f   :  { %414 = vsyncadd [#allocation6], 4294967168 }
 0x160   :  { %415 = dma.done.wait [#allocation11], 32  }
 0x161   :  { %416 = vsyncadd [#allocation11], 4294967264 }
 0x162   :  { %238 = vsyncpa [#allocation5], 1 }
 0x163   :  { %239 = vsyncpa [#allocation8], 1 }
 0x164   :  { %240 = vsyncpa [#allocation6], 1 }
 0x165   :  { %241 = vsyncpa [#allocation11], 1 }

</bundles_post_ra>
